<compile_context>
chip_gen: v5e
topology: v5e:2x2
jax: 0.10.0
libtpu: 0.0.40
codegen_flags: <defaults>
</compile_context>

<pallas_src>
import jax
import jax.numpy as jnp
from jax.experimental import pallas as pl
from jax.experimental.pallas import tpu as pltpu


def ann_kernel(x_ref, w1_ref, b1_ref, w2_ref, b2_ref, o_ref):
    # Layer 1: x @ W1^T + (bias1 + 0.5)   -- the +0.5 is pre-folded into b1_ref.
    a1 = (
        jnp.dot(x_ref[...], w1_ref[...], preferred_element_type=jnp.float32)
        + b1_ref[...]
    )
    # sigmoid(a) = 1 / (1 + exp(-a)); exp and approx reciprocal both run on the EUP
    # slot, keeping the VALU free.
    z1 = pl.reciprocal(1.0 + jnp.exp(-a1), approx=True)

    # Layer 2: z1 @ W2^T + (bias2 + 0.5)
    a2 = (
        jnp.dot(z1, w2_ref[...], preferred_element_type=jnp.float32)
        + b2_ref[...]
    )
    o_ref[...] = pl.reciprocal(1.0 + jnp.exp(-a2), approx=True)


def ann_forward(x, w1_t, b1_folded, w2_t, b2_folded, *, tm=None):
    """Fused 2-layer MLP with sigmoid activations.

    x:          (B, in_dim)
    w1_t:       (in_dim, hidden)   (= W1.T of the PyTorch Linear)
    b1_folded:  (1, hidden)        (= bias1 + 0.5)
    w2_t:       (hidden, out_dim)  (= W2.T of the PyTorch Linear)
    b2_folded:  (1, out_dim)       (= bias2 + 0.5)
    """
    B, in_dim = x.shape
    hidden = w1_t.shape[1]
    out_dim = w2_t.shape[1]

    # Batch tile size: take the full (tiny) batch in one step; when B scales up,
    # use 512-row tiles so each grid step amortizes the ~600-cycle step overhead
    # and the pipeliner can overlap x/out DMA behind compute.
    if tm is None:
        tm = B if B <= 512 else 512
    grid = (pl.cdiv(B, tm),)

    return pl.pallas_call(
        ann_kernel,
        out_shape=jax.ShapeDtypeStruct((B, out_dim), jnp.float32),
        grid_spec=pl.GridSpec(
            grid=grid,
            in_specs=[
                # x: tiled over the batch axis.
                pl.BlockSpec((tm, in_dim), lambda i: (i, 0)),
                # Weights/biases: constant block index -> stay VMEM-resident,
                # no re-DMA across grid steps.
                pl.BlockSpec((in_dim, hidden), lambda i: (0, 0)),
                pl.BlockSpec((1, hidden), lambda i: (0, 0)),
                pl.BlockSpec((hidden, out_dim), lambda i: (0, 0)),
                pl.BlockSpec((1, out_dim), lambda i: (0, 0)),
            ],
            out_specs=pl.BlockSpec((tm, out_dim), lambda i: (i, 0)),
        ),
        compiler_params=pltpu.CompilerParams(
            # Batch tiles are independent: shard across TensorCores on v7x.
            dimension_semantics=("parallel",),
        ),
    )(x, w1_t, b1_folded, w2_t, b2_folded)


def init_params(key, in_dim, hidden, out_dim):
    """Deterministic init mimicking torch.nn.Linear default:
    U(-1/sqrt(fan_in), 1/sqrt(fan_in)) for both weight and bias.
    Returns pre-transposed weights and biases with the model's constant +0.5
    already folded in."""
    k1, k2, k3, k4 = jax.random.split(key, 4)
    bound1 = 1.0 / jnp.sqrt(jnp.float32(in_dim))
    bound2 = 1.0 / jnp.sqrt(jnp.float32(hidden))
    w1 = jax.random.uniform(k1, (hidden, in_dim), jnp.float32, -bound1, bound1)
    b1 = jax.random.uniform(k2, (hidden,), jnp.float32, -bound1, bound1)
    w2 = jax.random.uniform(k3, (out_dim, hidden), jnp.float32, -bound2, bound2)
    b2 = jax.random.uniform(k4, (out_dim,), jnp.float32, -bound2, bound2)
    # Pre-transpose weights; fold the module's fixed +0.5 into each bias.
    return (
        w1.T,
        (b1 + 0.5).reshape(1, hidden),
        w2.T,
        (b2 + 0.5).reshape(1, out_dim),
    )


def ann_reference(x, w1_t, b1_folded, w2_t, b2_folded):
    # Same math as the module (the +0.5 lives inside the folded biases).
    a1 = x @ w1_t + b1_folded
    z1 = jax.nn.sigmoid(a1)
    a2 = z1 @ w2_t + b2_folded
    return jax.nn.sigmoid(a2)


if __name__ == "__main__":
    # Small shapes implied by the module: ANNModel(inputDimension=32,
    # hiddenDimension=64, outputDimension=16), batch of 8.
    B, IN_DIM, HIDDEN, OUT_DIM = 8, 32, 64, 16

    key = jax.random.PRNGKey(0)
    kx, kp = jax.random.split(key)
    x = jax.random.normal(kx, (B, IN_DIM), jnp.float32)
    w1_t, b1, w2_t, b2 = init_params(kp, IN_DIM, HIDDEN, OUT_DIM)

    out = ann_forward(x, w1_t, b1, w2_t, b2)
    jax.block_until_ready(out)

    ref = ann_reference(x, w1_t, b1, w2_t, b2)
    assert out.shape == (B, OUT_DIM)
    # Slightly relaxed tolerance: the approx (EUP) reciprocal in the in-kernel
    # sigmoid has ~1e-4-level relative error vs the exact f32 divide.
    assert jnp.allclose(out, ref, atol=5e-3, rtol=5e-3), "mismatch vs reference"

    print("KERNEL_OK")
</pallas_src>

<mosaic_0001>
module attributes {stable_mosaic.version = 11 : i64} {
  func.func @ann_kernel(%arg0: i32, %arg1: memref<8x32xf32, #tpu.memory_space<vmem>>, %arg2: memref<32x64xf32, #tpu.memory_space<vmem>>, %arg3: memref<1x64xf32, #tpu.memory_space<vmem>>, %arg4: memref<64x16xf32, #tpu.memory_space<vmem>>, %arg5: memref<1x16xf32, #tpu.memory_space<vmem>>, %arg6: memref<8x16xf32, #tpu.memory_space<vmem>>) attributes {dimension_semantics = [#tpu.dimension_semantics<parallel>], iteration_bounds = array<i64: 1>, scalar_prefetch = 0 : i64, scratch_operands = 0 : i64, tpu.core_type = #tpu.core_type<tc>, window_params = [{transform_indices = @transform_0, window_bounds = array<i64: 8, 32>}, {pipeline_mode = #tpu.pipeline_mode<synchronous>, transform_indices = @transform_1, window_bounds = array<i64: 32, 64>}, {pipeline_mode = #tpu.pipeline_mode<synchronous>, transform_indices = @transform_2, window_bounds = array<i64: 1, 64>}, {pipeline_mode = #tpu.pipeline_mode<synchronous>, transform_indices = @transform_3, window_bounds = array<i64: 64, 16>}, {pipeline_mode = #tpu.pipeline_mode<synchronous>, transform_indices = @transform_4, window_bounds = array<i64: 1, 16>}, {transform_indices = @transform_5, window_bounds = array<i64: 8, 16>}]} {
    %c0 = arith.constant 0 : index
    %c0_0 = arith.constant 0 : index
    %0 = vector.load %arg1[%c0, %c0_0] : memref<8x32xf32, #tpu.memory_space<vmem>>, vector<8x32xf32>
    %c0_1 = arith.constant 0 : index
    %c0_2 = arith.constant 0 : index
    %1 = vector.load %arg2[%c0_1, %c0_2] : memref<32x64xf32, #tpu.memory_space<vmem>>, vector<32x64xf32>
    %cst = arith.constant dense<0.000000e+00> : vector<8x64xf32>
    %2 = tpu.matmul %0, %1, %cst {dimension_numbers = #tpu.dot_dimension_numbers<[1], [0], [0], [1], [0, 0, 1, 1], [], []>} : vector<8x32xf32>, vector<32x64xf32>, vector<8x64xf32> -> vector<8x64xf32>
    %c0_3 = arith.constant 0 : index
    %c0_4 = arith.constant 0 : index
    %3 = vector.load %arg3[%c0_3, %c0_4] : memref<1x64xf32, #tpu.memory_space<vmem>>, vector<1x64xf32>
    %4 = vector.broadcast %3 : vector<1x64xf32> to vector<8x64xf32>
    %5 = arith.addf %2, %4 : vector<8x64xf32>
    %cst_5 = arith.constant 0.000000e+00 : f32
    %6 = vector.broadcast %cst_5 : f32 to vector<8x64xf32>
    %7 = arith.subf %6, %5 : vector<8x64xf32>
    %8 = math.exp %7 : vector<8x64xf32>
    %cst_6 = arith.constant 1.000000e+00 : f32
    %9 = vector.broadcast %cst_6 : f32 to vector<8x64xf32>
    %10 = arith.addf %9, %8 : vector<8x64xf32>
    %11 = tpu.reciprocal %10 {approx = true} : vector<8x64xf32> -> vector<8x64xf32>
    %c0_7 = arith.constant 0 : index
    %c0_8 = arith.constant 0 : index
    %12 = vector.load %arg4[%c0_7, %c0_8] : memref<64x16xf32, #tpu.memory_space<vmem>>, vector<64x16xf32>
    %cst_9 = arith.constant dense<0.000000e+00> : vector<8x16xf32>
    %13 = tpu.matmul %11, %12, %cst_9 {dimension_numbers = #tpu.dot_dimension_numbers<[1], [0], [0], [1], [0, 0, 1, 1], [], []>} : vector<8x64xf32>, vector<64x16xf32>, vector<8x16xf32> -> vector<8x16xf32>
    %c0_10 = arith.constant 0 : index
    %c0_11 = arith.constant 0 : index
    %14 = vector.load %arg5[%c0_10, %c0_11] : memref<1x16xf32, #tpu.memory_space<vmem>>, vector<1x16xf32>
    %15 = vector.broadcast %14 : vector<1x16xf32> to vector<8x16xf32>
    %16 = arith.addf %13, %15 : vector<8x16xf32>
    %cst_12 = arith.constant 0.000000e+00 : f32
    %17 = vector.broadcast %cst_12 : f32 to vector<8x16xf32>
    %18 = arith.subf %17, %16 : vector<8x16xf32>
    %19 = math.exp %18 : vector<8x16xf32>
    %cst_13 = arith.constant 1.000000e+00 : f32
    %20 = vector.broadcast %cst_13 : f32 to vector<8x16xf32>
    %21 = arith.addf %20, %19 : vector<8x16xf32>
    %22 = tpu.reciprocal %21 {approx = true} : vector<8x16xf32> -> vector<8x16xf32>
    %c0_14 = arith.constant 0 : index
    %c0_15 = arith.constant 0 : index
    %23 = vector.load %arg6[%c0_14, %c0_15] : memref<8x16xf32, #tpu.memory_space<vmem>>, vector<8x16xf32>
    tpu.vector_store %arg6[%c0_14, %c0_15], %22 {strides = array<i32>} : memref<8x16xf32, #tpu.memory_space<vmem>>, vector<8x16xf32>,
    return
  }
  func.func @transform_0(%arg0: i32) -> (i32, i32) {
    %c0_i32 = arith.constant 0 : i32
    %c0_i32_0 = arith.constant 0 : i32
    return %arg0, %c0_i32 : i32, i32
  }
  func.func @transform_1(%arg0: i32) -> (i32, i32) {
    %c0_i32 = arith.constant 0 : i32
    %c0_i32_0 = arith.constant 0 : i32
    %c0_i32_1 = arith.constant 0 : i32
    return %c0_i32, %c0_i32_0 : i32, i32
  }
  func.func @transform_2(%arg0: i32) -> (i32, i32) {
    %c0_i32 = arith.constant 0 : i32
    %c0_i32_0 = arith.constant 0 : i32
    %c0_i32_1 = arith.constant 0 : i32
    return %c0_i32, %c0_i32_0 : i32, i32
  }
  func.func @transform_3(%arg0: i32) -> (i32, i32) {
    %c0_i32 = arith.constant 0 : i32
    %c0_i32_0 = arith.constant 0 : i32
    %c0_i32_1 = arith.constant 0 : i32
    return %c0_i32, %c0_i32_0 : i32, i32
  }
  func.func @transform_4(%arg0: i32) -> (i32, i32) {
    %c0_i32 = arith.constant 0 : i32
    %c0_i32_0 = arith.constant 0 : i32
    %c0_i32_1 = arith.constant 0 : i32
    return %c0_i32, %c0_i32_0 : i32, i32
  }
  func.func @transform_5(%arg0: i32) -> (i32, i32) {
    %c0_i32 = arith.constant 0 : i32
    %c0_i32_0 = arith.constant 0 : i32
    return %arg0, %c0_i32 : i32, i32
  }
}

</mosaic_0001>

<bundles_post_ra>
// kernel: tpu_custom_call.1
= control target key start
LH: loop header
LB: loop body
LE: loop exit
PB: predicated region body
PF: predicated region fallthrough
CT: control target
= control target key end

     0   :  { %s236_s0 = inlined_call_operand.vmem [shape: f32[8,32], index: 0, kind: input, shape index: {}]   ;;  %s237_s1 = inlined_call_operand.vmem [shape: f32[32,64], index: 1, kind: input, shape index: {}]   ;;  %s238_s2 = inlined_call_operand.vmem [shape: f32[1,64], index: 2, kind: input, shape index: {}]   ;;  %s239_s3 = inlined_call_operand.vmem [shape: f32[64,16], index: 3, kind: input, shape index: {}]   ;;  %s240_s4 = inlined_call_operand.vmem [shape: f32[1,16], index: 4, kind: input, shape index: {}]   ;;  %s241_s5 = inlined_call_operand.hbm [shape: f32[8,16], index: 5, kind: output, shape index: {}]  }
   0x1   :  { %v25_v0 = vld [vmem:[%s237_s1 + $0x18] sm:$0xff]  ;;  %v24_v1 = vld [vmem:[%s237_s1 + $0x10] sm:$0xff]  ;;  %v23_v2 = vld [vmem:[%s237_s1 + $0x8] sm:$0xff] }
   0x2   :  { %46 = vmatpush.msra.mxu0 %v25_v0 }
   0x3   :  { %10 = vsyncpa [#allocation3], 0  ;;  %v22_v3 = vld [vmem:[%s237_s1] sm:$0xff]  ;;  %vm30_vm0 = vcmask 261120   ;;  %v66_v5 = vld [vmem:[%s239_s3 + $0x38] sm:$0xff]  ;;  %vm71_vm1 = vcmask 523264  }
   0x4   :  { %47 = vmatpush.msra.mxu0 %v24_v1  ;;  %v21_v4 = vld [vmem:[%s236_s0] sm:$0xff]  ;;  %83 = vmatpush.msra.mxu1 %v66_v5  ;;  %v65_v6 = vld [vmem:[%s239_s3 + $0x30] sm:$0xff]  ;;  %v64_v7 = vld [vmem:[%s239_s3 + $0x28] sm:$0xff]  ;;  %s109_s23 = sshll.u32 %s241_s5, 4  ;;  %vm100_vm2 = vcmask 130048   ;;  %s110_s23 = int_to_ptr.hbm [resolvable:$true] %s109_s23 }
   0x5   :  { %v63_v8 = vld [vmem:[%s239_s3 + $0x20] sm:$0xff]  ;;  %v62_v9 = vld [vmem:[%s239_s3 + $0x18] sm:$0xff]  ;;  %v61_v10 = vld [vmem:[%s239_s3 + $0x10] sm:$0xff] }
   0x6   :  { %48 = vmatpush.msra.mxu0 %v23_v2  ;;  %84 = vmatpush.msra.mxu1 %v65_v6  ;;  %v60_v11 = vld [vmem:[%s239_s3 + $0x8] sm:$0xff]  ;;  %v59_v12 = vld [vmem:[%s239_s3] sm:$0xff] }
   0x7   :  { %v121_v13 = vld [vmem:[%s238_s2] ss:$0 sm:$0xff]  ;;  %s157_s2 = smov [#allocation2]  }
   0x8   :  { %49 = vmatpush.msra.mxu0 %v22_v3  ;;  %85 = vmatpush.msra.mxu1 %v64_v7  ;;  %v122_v21 = vld [vmem:[%s240_s4] ss:$0 sm:$0xff]  ;;  %s107_s3 = sshll.u32 %s157_s2, 4  ;;  %s108_s3 = int_to_ptr.vmem [resolvable:$true] %s107_s3 }
   0x9   :  { %118 = vmatmul.msk.f32.vlgmr.msra.gmra.mxu0 %vm30_vm0, %v21_v4 }
   0xa   :  { %86 = vmatpush.msra.mxu1 %v63_v8 }
   0xc   :  { %87 = vmatpush.msra.mxu1 %v62_v9 }
   0xe   :  { %88 = vmatpush.msra.mxu1 %v61_v10 }
  0x10   :  { %89 = vmatpush.msra.mxu1 %v60_v11 }
  0x12   :  { %90 = vmatpush.msra.mxu1 %v59_v12 }
  0x86   :  { %v51_v14 = vpop.f32.mrf.mxu0 }
  0x87   :  { %v52_v15 = vadd.f32 %v121_v13, %v51_v14 }
  0x89   :  { %v54_v16 = vsub.f32 0.0, %v52_v15 }
  0x8b   :  { %v55_v17 = vmul.f32 1.442695, %v54_v16 }
  0x8d   :  { %123 = vpow2.f32 %v55_v17 }
  0x93   :  { %v124_v18 = vpop.eup %123 }
  0x94   :  { %v57_v19 = vadd.f32 1.0, %v124_v18 }
  0x96   :  { %125 = vrcp.f32 %v57_v19 }
  0x9c   :  { %v126_v20 = vpop.eup %125 }
  0x9d   :  { %119 = vmatmul.msk.f32.vlgmr.msra.gmra.mxu1 %vm71_vm1, %v126_v20 }
 0x11a   :  { %v92_v22 = vpop.f32.mrf.mxu1 }
 0x11b   :  { %v93_v23 = vadd.f32 %v122_v21, %v92_v22 }
 0x11d   :  { %v95_v24 = vsub.f32 0.0, %v93_v23 }
 0x11f   :  { %v96_v25 = vmul.f32 1.442695, %v95_v24 }
 0x121   :  { %127 = vpow2.f32 %v96_v25 }
 0x127   :  { %v128_v26 = vpop.eup %127 }
 0x128   :  { %v98_v27 = vadd.f32 1.0, %v128_v26 }
 0x12a   :  { %129 = vrcp.f32 %v98_v27 }
 0x130   :  { %v130_v28 = vpop.eup %129 }
 0x131   :  { %101 = vst.msk [vmem:[#allocation2] sm:$0xff] %vm100_vm2, %v130_v28 }
 0x132   :  { %112 = dma.vmem_to_hbm [thread:$0]  %s108_s3, 128, %s110_s23, [#allocation3]  }
 0x133   :  { %155 = dma.done.wait [#allocation3], 128  }
 0x134   :  { %156 = vsyncadd [#allocation3], 4294967168 }
 0x135   :  { %117 = vsyncpa [#allocation3], 1 }

</bundles_post_ra>
